<compile_context>
chip_gen: v7x
topology: tpu7x:2x2x1
jax: 0.10.0
libtpu: 0.0.40
codegen_flags: <defaults>
</compile_context>

<pallas_src>
import jax
import jax.numpy as jnp
from jax.experimental import pallas as pl
from jax.experimental.pallas import tpu as pltpu


def _round_up(x, m):
    return (x + m - 1) // m * m


def _make_gcn_kernel(resident_xw, tk):
    """Kernel for one (tm)-row tile of A_hat @ XW + b, reduced over the k grid axis."""

    def kernel(a_ref, xw_ref, b_ref, out_ref):
        k = pl.program_id(1)

        if resident_xw:
            # XW lives fully in VMEM; take the k-th (tk, c_pad) slice.
            start = pl.multiple_of(k * tk, tk)
            xw = xw_ref[pl.ds(start, tk), :]
        else:
            xw = xw_ref[...]

        # bf16 x bf16 -> f32 accumulation on the MXU.
        part = jnp.dot(a_ref[...], xw, preferred_element_type=jnp.float32)

        @pl.when(k == 0)
        def _():
            out_ref[...] = part

        @pl.when(k != 0)
        def _():
            out_ref[...] = out_ref[...] + part

        @pl.when(k == pl.num_programs(1) - 1)
        def _():
            out_ref[...] = out_ref[...] + b_ref[...]

    return kernel


def build_normalized_adjacency(edge_index, num_nodes, *, n_rows=None, n_cols=None,
                               dtype=jnp.float32):
    """GCN-normalized dense adjacency (A + I, symmetric norm), scatter-built directly
    into a tile-aligned (n_rows, n_cols) buffer of the requested dtype."""
    n_rows = num_nodes if n_rows is None else n_rows
    n_cols = num_nodes if n_cols is None else n_cols
    src, dst = edge_index[0], edge_index[1]
    loops = jnp.arange(num_nodes, dtype=edge_index.dtype)
    src = jnp.concatenate([src, loops])
    dst = jnp.concatenate([dst, loops])
    deg = jnp.zeros((num_nodes,), jnp.float32).at[dst].add(1.0)
    dinv = jnp.where(deg > 0, jax.lax.rsqrt(deg), 0.0)
    norm = dinv[dst] * dinv[src]
    # message flow src -> dst:  out[dst] += norm * x[src]  <=>  A_hat[dst, src] = norm
    a_hat = jnp.zeros((n_rows, n_cols), dtype).at[dst, src].add(norm.astype(dtype))
    return a_hat


def variational_linear_encoder(x, edge_index, w_mu, b_mu, w_ls, b_ls,
                               *, tm=512, tk=2048):
    """Returns (mu, logstd), each [N, C_out].  Weights stored as [C_in, C_out]."""
    n, c_in = x.shape
    c_out = w_mu.shape[1]

    # ---- tiling / lane padding (blocks satisfy the (8, 128) constraint) ----
    tm = min(tm, _round_up(n, 16))            # bf16 packs 16 rows/vreg
    # Prefer >= 2 row tiles so both v7x TensorCores get work (axis 0 is "parallel").
    if _round_up(n, tm) // tm < 2:
        half = _round_up((n + 1) // 2, 16)
        if 16 <= half < tm:
            tm = half
    tk = min(tk, _round_up(n, 128))           # reduction tile (lane-aligned)
    n_rows = _round_up(n, tm)                 # padded node (row) count
    n_cols = _round_up(n, tk)                 # padded reduction length
    c_pad = _round_up(2 * c_out, 128)         # lane-dense output width

    # ---- plain-JAX glue: adjacency + tiny fused feature transform ----
    a_p = build_normalized_adjacency(edge_index, n, n_rows=n_rows, n_cols=n_cols,
                                     dtype=jnp.bfloat16)                  # [Nr, Nc] bf16
    w_cat = jnp.concatenate([w_mu, w_ls], axis=1)                         # [C_in, 2*C_out]
    b_cat = jnp.concatenate([jnp.reshape(b_mu, (1, -1)),
                             jnp.reshape(b_ls, (1, -1))], axis=1)         # [1, 2*C_out]
    xw = x.astype(jnp.float32) @ w_cat                                    # [N, 2*C_out]

    xw_p = jnp.zeros((n_cols, c_pad), jnp.bfloat16).at[:n, :2 * c_out].set(
        xw.astype(jnp.bfloat16))
    b_p = jnp.zeros((1, c_pad), jnp.float32).at[:, :2 * c_out].set(
        b_cat.astype(jnp.float32))

    # Hold XW fully VMEM-resident when it fits comfortably; A_hat is then the only
    # streamed operand.
    resident_xw = n_cols * c_pad * 2 <= 8 * 1024 * 1024
    if resident_xw:
        xw_spec = pl.BlockSpec((n_cols, c_pad), lambda i, k: (0, 0))
    else:
        xw_spec = pl.BlockSpec((tk, c_pad), lambda i, k: (k, 0))

    # VMEM budget: double-buffered bf16 A tiles + XW + f32 output tile; capped at
    # 48 MiB so the limit is also safe on v7x's 64 MiB VMEM.
    a_bytes = 2 * tm * tk * 2
    xw_bytes = 2 * (n_cols * c_pad * 2) if resident_xw else 2 * (tk * c_pad * 2)
    out_bytes = 2 * tm * c_pad * 4
    need = a_bytes + xw_bytes + out_bytes + 2 * c_pad * 4
    vmem_limit = max(32 * 1024 * 1024, min(int(need * 2), 48 * 1024 * 1024))

    grid = (n_rows // tm, n_cols // tk)

    out = pl.pallas_call(
        _make_gcn_kernel(resident_xw, tk),
        out_shape=jax.ShapeDtypeStruct((n_rows, c_pad), jnp.float32),
        grid_spec=pltpu.PrefetchScalarGridSpec(
            num_scalar_prefetch=0,
            grid=grid,
            in_specs=[
                pl.BlockSpec((tm, tk), lambda i, k: (i, k)),      # A_hat tile (streamed)
                xw_spec,                                          # XW (resident or streamed)
                pl.BlockSpec((1, c_pad), lambda i, k: (0, 0)),    # bias (VMEM-resident)
            ],
            out_specs=pl.BlockSpec((tm, c_pad), lambda i, k: (i, 0)),
        ),
        compiler_params=pltpu.CompilerParams(
            dimension_semantics=("parallel", "arbitrary"),
            vmem_limit_bytes=vmem_limit,
        ),
    )(a_p, xw_p, b_p)

    mu = out[:n, :c_out]
    logstd = out[:n, c_out:2 * c_out]
    return mu, logstd


if __name__ == "__main__":
    # Small, module-consistent shapes: N graph nodes, in_channels, out_channels.
    N, C_IN, C_OUT, E = 16, 8, 32, 48

    key = jax.random.PRNGKey(0)
    kx, ke, kwm, kbm, kwl, kbl = jax.random.split(key, 6)

    x = jax.random.normal(kx, (N, C_IN), dtype=jnp.float32)
    edge_index = jax.random.randint(ke, (2, E), 0, N, dtype=jnp.int32)

    # Deterministic synthetic parameters (shapes match GCNConv's Linear + bias).
    w_mu = jax.random.normal(kwm, (C_IN, C_OUT), dtype=jnp.float32) * 0.1
    b_mu = jax.random.normal(kbm, (1, C_OUT), dtype=jnp.float32) * 0.1
    w_ls = jax.random.normal(kwl, (C_IN, C_OUT), dtype=jnp.float32) * 0.1
    b_ls = jax.random.normal(kbl, (1, C_OUT), dtype=jnp.float32) * 0.1

    mu, logstd = jax.jit(variational_linear_encoder)(x, edge_index,
                                                     w_mu, b_mu, w_ls, b_ls)
    jax.block_until_ready((mu, logstd))

    # Reference check against plain-JAX dense GCN math (f32); kernel carries
    # A_hat / XW in bf16 so tolerances are loosened accordingly.
    a_hat = build_normalized_adjacency(edge_index, N)
    mu_ref = a_hat @ x @ w_mu + b_mu
    ls_ref = a_hat @ x @ w_ls + b_ls
    assert mu.shape == (N, C_OUT) and logstd.shape == (N, C_OUT)
    assert jnp.allclose(mu, mu_ref, atol=5e-2, rtol=5e-2)
    assert jnp.allclose(logstd, ls_ref, atol=5e-2, rtol=5e-2)

    print("KERNEL_OK")
</pallas_src>

<mosaic_0001>
module attributes {stable_mosaic.version = 11 : i64} {
  func.func private @main(%arg0: i32) attributes {dimension_semantics = [#tpu.dimension_semantics<core_parallel>], iteration_bounds = array<i64: 2>, tpu.core_type = #tpu.core_type<sc_scalar_subcore>, window_params = []} {
    return
  }
}

module attributes {stable_mosaic.version = 11 : i64} {
  func.func private @main(%arg0: i32) attributes {dimension_semantics = [#tpu.dimension_semantics<core_parallel>], iteration_bounds = array<i64: 2>, tpu.core_type = #tpu.core_type<sc_scalar_subcore>, window_params = []} {
    return
  }
}

module attributes {stable_mosaic.version = 11 : i64} {
  func.func @kernel(%arg0: i32, %arg1: i32, %arg2: memref<16x128xbf16, #tpu.memory_space<vmem>>, %arg3: memref<128x128xbf16, #tpu.memory_space<vmem>>, %arg4: memref<1x128xf32, #tpu.memory_space<vmem>>, %arg5: memref<16x128xf32, #tpu.memory_space<vmem>>) attributes {dimension_semantics = [#tpu.dimension_semantics<parallel>, #tpu.dimension_semantics<arbitrary>], iteration_bounds = array<i64: 1, 1>, scalar_prefetch = 0 : i64, scratch_operands = 0 : i64, tpu.core_type = #tpu.core_type<tc>, window_params = [{transform_indices = @transform_0, window_bounds = array<i64: 16, 128>}, {pipeline_mode = #tpu.pipeline_mode<synchronous>, transform_indices = @transform_1, window_bounds = array<i64: 128, 128>}, {pipeline_mode = #tpu.pipeline_mode<synchronous>, transform_indices = @transform_2, window_bounds = array<i64: 1, 128>}, {transform_indices = @transform_3, window_bounds = array<i64: 16, 128>}]} {
    %c128_i32 = arith.constant 128 : i32
    %0 = arith.muli %arg1, %c128_i32 : i32
    %1 = tpu.assume_multiple %0, 128 : i32
    %2 = arith.index_cast %1 : i32 to index
    %c0 = arith.constant 0 : index
    %3 = vector.load %arg3[%2, %c0] : memref<128x128xbf16, #tpu.memory_space<vmem>>, vector<128x128xbf16>
    %c0_0 = arith.constant 0 : index
    %c0_1 = arith.constant 0 : index
    %4 = vector.load %arg2[%c0_0, %c0_1] : memref<16x128xbf16, #tpu.memory_space<vmem>>, vector<16x128xbf16>
    %cst = arith.constant dense<0.000000e+00> : vector<16x128xf32>
    %5 = tpu.matmul %4, %3, %cst {dimension_numbers = #tpu.dot_dimension_numbers<[1], [0], [0], [1], [0, 0, 1, 1], [], []>} : vector<16x128xbf16>, vector<128x128xbf16>, vector<16x128xf32> -> vector<16x128xf32>
    %c0_i32 = arith.constant 0 : i32
    %6 = arith.cmpi eq, %arg1, %c0_i32 : i32
    %7 = arith.extui %6 : i1 to i32
    %c0_i32_2 = arith.constant 0 : i32
    %8 = arith.cmpi ne, %7, %c0_i32_2 : i32
    scf.if %8 {
      %c0_7 = arith.constant 0 : index
      %c0_8 = arith.constant 0 : index
      %15 = vector.load %arg5[%c0_7, %c0_8] : memref<16x128xf32, #tpu.memory_space<vmem>>, vector<16x128xf32>
      tpu.vector_store %arg5[%c0_7, %c0_8], %5 {strides = array<i32>} : memref<16x128xf32, #tpu.memory_space<vmem>>, vector<16x128xf32>,
    } else {
    }
    %c0_i32_3 = arith.constant 0 : i32
    %9 = arith.cmpi ne, %arg1, %c0_i32_3 : i32
    %10 = arith.extui %9 : i1 to i32
    %c0_i32_4 = arith.constant 0 : i32
    %11 = arith.cmpi ne, %10, %c0_i32_4 : i32
    scf.if %11 {
      %c0_7 = arith.constant 0 : index
      %c0_8 = arith.constant 0 : index
      %15 = vector.load %arg5[%c0_7, %c0_8] : memref<16x128xf32, #tpu.memory_space<vmem>>, vector<16x128xf32>
      %16 = arith.addf %15, %5 : vector<16x128xf32>
      %c0_9 = arith.constant 0 : index
      %c0_10 = arith.constant 0 : index
      %17 = vector.load %arg5[%c0_9, %c0_10] : memref<16x128xf32, #tpu.memory_space<vmem>>, vector<16x128xf32>
      tpu.vector_store %arg5[%c0_9, %c0_10], %16 {strides = array<i32>} : memref<16x128xf32, #tpu.memory_space<vmem>>, vector<16x128xf32>,
    } else {
    }
    %c0_i32_5 = arith.constant 0 : i32
    %12 = arith.cmpi eq, %arg1, %c0_i32_5 : i32
    %13 = arith.extui %12 : i1 to i32
    %c0_i32_6 = arith.constant 0 : i32
    %14 = arith.cmpi ne, %13, %c0_i32_6 : i32
    scf.if %14 {
      %c0_7 = arith.constant 0 : index
      %c0_8 = arith.constant 0 : index
      %15 = vector.load %arg5[%c0_7, %c0_8] : memref<16x128xf32, #tpu.memory_space<vmem>>, vector<16x128xf32>
      %c0_9 = arith.constant 0 : index
      %c0_10 = arith.constant 0 : index
      %16 = vector.load %arg4[%c0_9, %c0_10] : memref<1x128xf32, #tpu.memory_space<vmem>>, vector<1x128xf32>
      %17 = vector.broadcast %16 : vector<1x128xf32> to vector<16x128xf32>
      %18 = arith.addf %15, %17 : vector<16x128xf32>
      %c0_11 = arith.constant 0 : index
      %c0_12 = arith.constant 0 : index
      %19 = vector.load %arg5[%c0_11, %c0_12] : memref<16x128xf32, #tpu.memory_space<vmem>>, vector<16x128xf32>
      tpu.vector_store %arg5[%c0_11, %c0_12], %18 {strides = array<i32>} : memref<16x128xf32, #tpu.memory_space<vmem>>, vector<16x128xf32>,
    } else {
    }
    return
  }
  func.func @transform_0(%arg0: i32, %arg1: i32) -> (i32, i32) {
    %c0_i32 = arith.constant 0 : i32
    return %arg0, %arg1 : i32, i32
  }
  func.func @transform_1(%arg0: i32, %arg1: i32) -> (i32, i32) {
    %c0_i32 = arith.constant 0 : i32
    %c0_i32_0 = arith.constant 0 : i32
    %c0_i32_1 = arith.constant 0 : i32
    return %c0_i32, %c0_i32_0 : i32, i32
  }
  func.func @transform_2(%arg0: i32, %arg1: i32) -> (i32, i32) {
    %c0_i32 = arith.constant 0 : i32
    %c0_i32_0 = arith.constant 0 : i32
    %c0_i32_1 = arith.constant 0 : i32
    return %c0_i32, %c0_i32_0 : i32, i32
  }
  func.func @transform_3(%arg0: i32, %arg1: i32) -> (i32, i32) {
    %c0_i32 = arith.constant 0 : i32
    %c0_i32_0 = arith.constant 0 : i32
    return %arg0, %c0_i32 : i32, i32
  }
}

</mosaic_0001>

<bundles_post_ra>
// kernel: variational_linear_encoder.1
= control target key start
LH: loop header
LB: loop body
LE: loop exit
PB: predicated region body
PF: predicated region fallthrough
CT: control target
= control target key end

     0   :  { %v221_v0 = vmov 0.0   ;;  %vm222_vm0 = vmmov 0   ;;  %s279_s1 = inlined_call_operand.vmem [shape: bf16[128,128], index: 1, kind: input, shape index: {}]   ;;  %s280_s0 = inlined_call_operand.vmem [shape: bf16[16,128], index: 0, kind: input, shape index: {}]   ;;  %s281_s2 = inlined_call_operand.vmem [shape: f32[1,128], index: 2, kind: input, shape index: {}]   ;;  %s282_s3 = inlined_call_operand.vmem [shape: f32[16,128], index: 3, kind: output, shape index: {}]  }
   0x1   :  { %190 = vmatprep.subr.bf16.mxu0 %v221_v0  ;;  %v212_v1 = vld [vmem:[%s279_s1] sm:$0xff]   ;;  %206 = vmatprep.mubr.msk.bf16.mxu0 %vm222_vm0, %v221_v0  ;;  %v213_v2 = vld [vmem:[%s279_s1 + $0x8] sm:$0xff]   ;;  %v214_v3 = vld [vmem:[%s279_s1 + $0x10] sm:$0xff]  }
   0x2   :  { %191 = vmatpush3.bf16.msra.mxu0 %v212_v1  ;;  %v215_v4 = vld [vmem:[%s279_s1 + $0x18] sm:$0xff]   ;;  %v216_v5 = vld [vmem:[%s279_s1 + $0x20] sm:$0xff]   ;;  %v217_v6 = vld [vmem:[%s279_s1 + $0x28] sm:$0xff]  }
   0x3   :  { %192 = vmatprep.subr.bf16.mxu0 %v221_v0  ;;  %v218_v7 = vld [vmem:[%s279_s1 + $0x30] sm:$0xff]   ;;  %v219_v8 = vld [vmem:[%s279_s1 + $0x38] sm:$0xff]   ;;  %v220_v9 = vld [vmem:[%s280_s0] sm:$0xff]  }
   0x4   :  { %v180_v10 = vld [vmem:[%s281_s2] ss:$0 sm:$0xff] }
   0x6   :  { %193 = vmatpush3.bf16.msra.mxu0 %v213_v2 }
   0x7   :  { %194 = vmatprep.subr.bf16.mxu0 %v221_v0 }
   0xa   :  { %195 = vmatpush3.bf16.msra.mxu0 %v214_v3 }
   0xb   :  { %196 = vmatprep.subr.bf16.mxu0 %v221_v0 }
   0xe   :  { %197 = vmatpush3.bf16.msra.mxu0 %v215_v4 }
   0xf   :  { %198 = vmatprep.subr.bf16.mxu0 %v221_v0 }
  0x12   :  { %199 = vmatpush3.bf16.msra.mxu0 %v216_v5 }
  0x13   :  { %200 = vmatprep.subr.bf16.mxu0 %v221_v0 }
  0x16   :  { %201 = vmatpush3.bf16.msra.mxu0 %v217_v6 }
  0x17   :  { %202 = vmatprep.subr.bf16.mxu0 %v221_v0 }
  0x1a   :  { %203 = vmatpush3.bf16.msra.mxu0 %v218_v7 }
  0x1b   :  { %204 = vmatprep.subr.bf16.mxu0 %v221_v0 }
  0x1e   :  { %205 = vmatpush3.bf16.msra.mxu0 %v219_v8 }
  0x21   :  { %207 = vmatmul.mubr.bf16.vlgmr.msra.gmra.mrb[0].mxu0 %v220_v9 }
  0xf4   :  { %v126_v11 = vpop.f32.mrb[0].mxu0 }
  0xf5   :  { %v161_v12 = vadd.f32 %v180_v10, %v126_v11  ;;  %v208_v13 = vpop.f32.mrb[1].mxu0 }
  0xf6   :  { %v129_v14 = vpop.f32.mrb[2].mxu0 }
  0xf7   :  { %163 = vst [vmem:[%s282_s3] sm:$0xff] %v161_v12  ;;  %v162_v15 = vadd.f32 %v180_v10, %v129_v14  ;;  %v209_v16 = vpop.f32.mrb[3].mxu0 }
  0xf9   :  { %164 = vst [vmem:[%s282_s3 + $0x8] sm:$0xff] %v162_v15 }

</bundles_post_ra>
